<compile_context>
chip_gen: v6e
topology: v6e:2x2x1
jax: 0.10.0
libtpu: 0.0.40
codegen_flags: <defaults>
</compile_context>

<pallas_src>
import jax
import jax.numpy as jnp
from jax.experimental import pallas as pl
from jax.experimental.pallas import tpu as pltpu


def mlp_kernel(x_ref, w1_ref, b1_ref, w2_ref, b2_ref, w3_ref, b3_ref, o_ref):
    # Layer 1: bf16 x bf16 MXU dot, f32 accumulate; bias + ReLU in f32 on the VPU.
    h = jnp.dot(x_ref[...], w1_ref[...], preferred_element_type=jnp.float32)
    h = jnp.maximum(h + b1_ref[...], 0.0)
    # Layer 2
    h = jnp.dot(h.astype(jnp.bfloat16), w2_ref[...],
                preferred_element_type=jnp.float32)
    h = jnp.maximum(h + b2_ref[...], 0.0)
    # Layer 3 (no activation)
    h = jnp.dot(h.astype(jnp.bfloat16), w3_ref[...],
                preferred_element_type=jnp.float32)
    h = h + b3_ref[...]
    o_ref[...] = h.astype(o_ref.dtype)


def prepare_params(params):
    """One-time parameter prep (hoisted out of the forward path).

    Torch Linear stores W as (out, in); store it as (in, out) bf16 so the kernel
    does plain `x @ W` on the MXU.  Biases kept f32 as (1, out) rows.
    """
    return {
        "w1": params["w1"].T.astype(jnp.bfloat16),
        "w2": params["w2"].T.astype(jnp.bfloat16),
        "w3": params["w3"].T.astype(jnp.bfloat16),
        "b1": params["b1"].reshape(1, -1).astype(jnp.float32),
        "b2": params["b2"].reshape(1, -1).astype(jnp.float32),
        "b3": params["b3"].reshape(1, -1).astype(jnp.float32),
    }


def mlp_forward(x, prep, *, tile_b=2048):
    """x: (B, ...) -> flattened to (B, D_in). prep: output of prepare_params."""
    B = x.shape[0]
    x2d = x.reshape(B, -1).astype(jnp.bfloat16)
    d_in = x2d.shape[1]
    out_dim = prep["w3"].shape[1]

    # Pad the batch to a sublane multiple (8) so every block shape is legal.
    b_pad = ((B + 7) // 8) * 8
    if b_pad != B:
        x2d = jnp.pad(x2d, ((0, b_pad - B), (0, 0)))
    tb = min(tile_b, b_pad)
    grid = (pl.cdiv(b_pad, tb),)

    # Weights / biases stay resident in VMEM across the batch grid.
    def resident(arr):
        return pl.BlockSpec(arr.shape, lambda i: (0, 0))

    out = pl.pallas_call(
        mlp_kernel,
        out_shape=jax.ShapeDtypeStruct((b_pad, out_dim), jnp.float32),
        grid=grid,
        in_specs=[
            pl.BlockSpec((tb, d_in), lambda i: (i, 0)),   # x: streamed per batch tile
            resident(prep["w1"]),
            resident(prep["b1"]),
            resident(prep["w2"]),
            resident(prep["b2"]),
            resident(prep["w3"]),
            resident(prep["b3"]),
        ],
        out_specs=pl.BlockSpec((tb, out_dim), lambda i: (i, 0)),
        compiler_params=pltpu.CompilerParams(
            dimension_semantics=("parallel",),   # v7x: shard batch tiles across 2 TCs
        ),
    )(x2d, prep["w1"], prep["b1"], prep["w2"], prep["b2"], prep["w3"], prep["b3"])

    return out[:B] if b_pad != B else out


def init_params(key, layer_sizes):
    """Deterministic init matching torch.nn.Linear shapes: W (out, in), b (out,)."""
    params = {}
    keys = jax.random.split(key, 2 * (len(layer_sizes) - 1))
    for i in range(len(layer_sizes) - 1):
        fan_in, fan_out = layer_sizes[i], layer_sizes[i + 1]
        bound = 1.0 / jnp.sqrt(fan_in)
        params[f"w{i + 1}"] = jax.random.uniform(
            keys[2 * i], (fan_out, fan_in), jnp.float32, -bound, bound
        )
        params[f"b{i + 1}"] = jax.random.uniform(
            keys[2 * i + 1], (fan_out,), jnp.float32, -bound, bound
        )
    return params


def _reference(x, params):
    x2d = x.reshape(x.shape[0], -1).astype(jnp.float32)
    h = jnp.maximum(x2d @ params["w1"].T + params["b1"], 0.0)
    h = jnp.maximum(h @ params["w2"].T + params["b2"], 0.0)
    return h @ params["w3"].T + params["b3"]


if __name__ == "__main__":
    # opt: task='3d-printing', pt_input_half_len=3, mlp_hidden_sizes=[32, 32]
    pt_input_half_len = 3
    ori_input_len = (pt_input_half_len * 2 + 1) * 2   # 14
    layer_sizes = [ori_input_len, 32, 32, 2]

    key = jax.random.PRNGKey(0)
    k_params, k_x1, k_x2 = jax.random.split(key, 3)
    params = init_params(k_params, layer_sizes)
    prep = prepare_params(params)

    # NOTE: at tiny batches like this, plain XLA matmuls beat any Pallas launch;
    # the kernel is meant for large, HBM-bound batches.  Small shapes here are
    # for correctness only.

    # Case 1: tiny batch, single tile.  (B, 2, 2*half_len+1) -> view(B, -1) = (B, 14)
    batch1 = 8
    x1 = jax.random.normal(k_x1, (batch1, 2, pt_input_half_len * 2 + 1), jnp.float32)
    out1 = jax.block_until_ready(mlp_forward(x1, prep))
    ref1 = _reference(x1, params)
    assert out1.shape == (batch1, 2)
    assert jnp.allclose(out1, ref1, atol=3e-2, rtol=3e-2)

    # Case 2: non-multiple-of-8 batch with a multi-tile grid (exercises padding +
    # partial last block + resident weights across grid steps).
    batch2 = 300
    x2 = jax.random.normal(k_x2, (batch2, 2, pt_input_half_len * 2 + 1), jnp.float32)
    out2 = jax.block_until_ready(mlp_forward(x2, prep, tile_b=128))
    ref2 = _reference(x2, params)
    assert out2.shape == (batch2, 2)
    assert jnp.allclose(out2, ref2, atol=3e-2, rtol=3e-2)

    print("KERNEL_OK")
</pallas_src>

<mosaic_0001>
module attributes {stable_mosaic.version = 11 : i64} {
  func.func @mlp_kernel(%arg0: i32, %arg1: memref<8x14xbf16, #tpu.memory_space<vmem>>, %arg2: memref<14x32xbf16, #tpu.memory_space<vmem>>, %arg3: memref<1x32xf32, #tpu.memory_space<vmem>>, %arg4: memref<32x32xbf16, #tpu.memory_space<vmem>>, %arg5: memref<1x32xf32, #tpu.memory_space<vmem>>, %arg6: memref<32x2xbf16, #tpu.memory_space<vmem>>, %arg7: memref<1x2xf32, #tpu.memory_space<vmem>>, %arg8: memref<8x2xf32, #tpu.memory_space<vmem>>) attributes {dimension_semantics = [#tpu.dimension_semantics<parallel>], iteration_bounds = array<i64: 1>, scalar_prefetch = 0 : i64, scratch_operands = 0 : i64, tpu.core_type = #tpu.core_type<tc>, window_params = [{transform_indices = @transform_0, window_bounds = array<i64: 8, 14>}, {pipeline_mode = #tpu.pipeline_mode<synchronous>, transform_indices = @transform_1, window_bounds = array<i64: 14, 32>}, {pipeline_mode = #tpu.pipeline_mode<synchronous>, transform_indices = @transform_2, window_bounds = array<i64: 1, 32>}, {pipeline_mode = #tpu.pipeline_mode<synchronous>, transform_indices = @transform_3, window_bounds = array<i64: 32, 32>}, {pipeline_mode = #tpu.pipeline_mode<synchronous>, transform_indices = @transform_4, window_bounds = array<i64: 1, 32>}, {pipeline_mode = #tpu.pipeline_mode<synchronous>, transform_indices = @transform_5, window_bounds = array<i64: 32, 2>}, {pipeline_mode = #tpu.pipeline_mode<synchronous>, transform_indices = @transform_6, window_bounds = array<i64: 1, 2>}, {transform_indices = @transform_7, window_bounds = array<i64: 8, 2>}]} {
    %c0 = arith.constant 0 : index
    %c0_0 = arith.constant 0 : index
    %0 = vector.load %arg1[%c0, %c0_0] : memref<8x14xbf16, #tpu.memory_space<vmem>>, vector<8x14xbf16>
    %c0_1 = arith.constant 0 : index
    %c0_2 = arith.constant 0 : index
    %1 = vector.load %arg2[%c0_1, %c0_2] : memref<14x32xbf16, #tpu.memory_space<vmem>>, vector<14x32xbf16>
    %cst = arith.constant dense<0.000000e+00> : vector<8x32xf32>
    %2 = tpu.matmul %0, %1, %cst {dimension_numbers = #tpu.dot_dimension_numbers<[1], [0], [0], [1], [0, 0, 1, 1], [], []>} : vector<8x14xbf16>, vector<14x32xbf16>, vector<8x32xf32> -> vector<8x32xf32>
    %c0_3 = arith.constant 0 : index
    %c0_4 = arith.constant 0 : index
    %3 = vector.load %arg3[%c0_3, %c0_4] : memref<1x32xf32, #tpu.memory_space<vmem>>, vector<1x32xf32>
    %4 = vector.broadcast %3 : vector<1x32xf32> to vector<8x32xf32>
    %5 = arith.addf %2, %4 : vector<8x32xf32>
    %cst_5 = arith.constant 0.000000e+00 : f32
    %6 = vector.broadcast %cst_5 : f32 to vector<8x32xf32>
    %7 = arith.maximumf %5, %6 : vector<8x32xf32>
    %8 = arith.truncf %7 : vector<8x32xf32> to vector<8x32xbf16>
    %c0_6 = arith.constant 0 : index
    %c0_7 = arith.constant 0 : index
    %9 = vector.load %arg4[%c0_6, %c0_7] : memref<32x32xbf16, #tpu.memory_space<vmem>>, vector<32x32xbf16>
    %cst_8 = arith.constant dense<0.000000e+00> : vector<8x32xf32>
    %10 = tpu.matmul %8, %9, %cst_8 {dimension_numbers = #tpu.dot_dimension_numbers<[1], [0], [0], [1], [0, 0, 1, 1], [], []>} : vector<8x32xbf16>, vector<32x32xbf16>, vector<8x32xf32> -> vector<8x32xf32>
    %c0_9 = arith.constant 0 : index
    %c0_10 = arith.constant 0 : index
    %11 = vector.load %arg5[%c0_9, %c0_10] : memref<1x32xf32, #tpu.memory_space<vmem>>, vector<1x32xf32>
    %12 = vector.broadcast %11 : vector<1x32xf32> to vector<8x32xf32>
    %13 = arith.addf %10, %12 : vector<8x32xf32>
    %cst_11 = arith.constant 0.000000e+00 : f32
    %14 = vector.broadcast %cst_11 : f32 to vector<8x32xf32>
    %15 = arith.maximumf %13, %14 : vector<8x32xf32>
    %16 = arith.truncf %15 : vector<8x32xf32> to vector<8x32xbf16>
    %c0_12 = arith.constant 0 : index
    %c0_13 = arith.constant 0 : index
    %17 = vector.load %arg6[%c0_12, %c0_13] : memref<32x2xbf16, #tpu.memory_space<vmem>>, vector<32x2xbf16>
    %cst_14 = arith.constant dense<0.000000e+00> : vector<8x2xf32>
    %18 = tpu.matmul %16, %17, %cst_14 {dimension_numbers = #tpu.dot_dimension_numbers<[1], [0], [0], [1], [0, 0, 1, 1], [], []>} : vector<8x32xbf16>, vector<32x2xbf16>, vector<8x2xf32> -> vector<8x2xf32>
    %c0_15 = arith.constant 0 : index
    %c0_16 = arith.constant 0 : index
    %19 = vector.load %arg7[%c0_15, %c0_16] : memref<1x2xf32, #tpu.memory_space<vmem>>, vector<1x2xf32>
    %20 = vector.broadcast %19 : vector<1x2xf32> to vector<8x2xf32>
    %21 = arith.addf %18, %20 : vector<8x2xf32>
    %c0_17 = arith.constant 0 : index
    %c0_18 = arith.constant 0 : index
    %22 = vector.load %arg8[%c0_17, %c0_18] : memref<8x2xf32, #tpu.memory_space<vmem>>, vector<8x2xf32>
    tpu.vector_store %arg8[%c0_17, %c0_18], %21 {strides = array<i32>} : memref<8x2xf32, #tpu.memory_space<vmem>>, vector<8x2xf32>,
    return
  }
  func.func @transform_0(%arg0: i32) -> (i32, i32) {
    %c0_i32 = arith.constant 0 : i32
    %c0_i32_0 = arith.constant 0 : i32
    return %arg0, %c0_i32 : i32, i32
  }
  func.func @transform_1(%arg0: i32) -> (i32, i32) {
    %c0_i32 = arith.constant 0 : i32
    %c0_i32_0 = arith.constant 0 : i32
    %c0_i32_1 = arith.constant 0 : i32
    return %c0_i32, %c0_i32_0 : i32, i32
  }
  func.func @transform_2(%arg0: i32) -> (i32, i32) {
    %c0_i32 = arith.constant 0 : i32
    %c0_i32_0 = arith.constant 0 : i32
    %c0_i32_1 = arith.constant 0 : i32
    return %c0_i32, %c0_i32_0 : i32, i32
  }
  func.func @transform_3(%arg0: i32) -> (i32, i32) {
    %c0_i32 = arith.constant 0 : i32
    %c0_i32_0 = arith.constant 0 : i32
    %c0_i32_1 = arith.constant 0 : i32
    return %c0_i32, %c0_i32_0 : i32, i32
  }
  func.func @transform_4(%arg0: i32) -> (i32, i32) {
    %c0_i32 = arith.constant 0 : i32
    %c0_i32_0 = arith.constant 0 : i32
    %c0_i32_1 = arith.constant 0 : i32
    return %c0_i32, %c0_i32_0 : i32, i32
  }
  func.func @transform_5(%arg0: i32) -> (i32, i32) {
    %c0_i32 = arith.constant 0 : i32
    %c0_i32_0 = arith.constant 0 : i32
    %c0_i32_1 = arith.constant 0 : i32
    return %c0_i32, %c0_i32_0 : i32, i32
  }
  func.func @transform_6(%arg0: i32) -> (i32, i32) {
    %c0_i32 = arith.constant 0 : i32
    %c0_i32_0 = arith.constant 0 : i32
    %c0_i32_1 = arith.constant 0 : i32
    return %c0_i32, %c0_i32_0 : i32, i32
  }
  func.func @transform_7(%arg0: i32) -> (i32, i32) {
    %c0_i32 = arith.constant 0 : i32
    %c0_i32_0 = arith.constant 0 : i32
    return %arg0, %c0_i32 : i32, i32
  }
}

</mosaic_0001>

<bundles_post_ra>
// kernel: tpu_custom_call.1
= control target key start
LH: loop header
LB: loop body
LE: loop exit
PB: predicated region body
PF: predicated region fallthrough
CT: control target
= control target key end

     0   :  { %12 = vsyncpa [#allocation3], 0  ;;  %s321_s24 = smov [#allocation2]   ;;  %s396_s0 = inlined_call_operand.vmem [shape: bf16[8,14], index: 0, kind: input, shape index: {}]   ;;  %s397_s1 = inlined_call_operand.hbm [shape: bf16[14,32], index: 1, kind: input, shape index: {}]   ;;  %s398_s2 = inlined_call_operand.vmem [shape: f32[1,32], index: 2, kind: input, shape index: {}]   ;;  %s399_s3 = inlined_call_operand.vmem [shape: bf16[32,32], index: 3, kind: input, shape index: {}]   ;;  %s400_s4 = inlined_call_operand.vmem [shape: f32[1,32], index: 4, kind: input, shape index: {}]   ;;  %s401_s5 = inlined_call_operand.vmem [shape: bf16[32,2], index: 5, kind: input, shape index: {}]   ;;  %s402_s6 = inlined_call_operand.vmem [shape: f32[1,2], index: 6, kind: input, shape index: {}]   ;;  %s403_s7 = inlined_call_operand.vmem [shape: f32[8,2], index: 7, kind: output, shape index: {}]  }
   0x1   :  { %s20_s25 = sshll.u32 %s321_s24, 4  ;;  %s21_s25 = int_to_ptr.vmem [resolvable:$true] %s20_s25 }
   0x2   :  { %s307_s26 = scalar_lea.vmem %s21_s25, 128  ;;  %p312_p1 = scmp.lt.s32.totalorder %s21_s25, %s21_s25 }
   0x3   :  { %p308_p0 = scmp.ne.s32.totalorder %s21_s25, %s307_s26  ;;  %p313_p2 = scmp.lt.s32.totalorder %s307_s26, %s307_s26 }
   0x5   :  { %p314_p3 = por %p313_p2, %p312_p1 }
   0x7   :  { %p315_p4 = pnand %p314_p3, %p308_p0 }
   0x9   :  { %318 = shalt.err (!%p315_p4)
}
   0xa   :  { %s322_s27 = smov 64   ;;  %s323_s28 = smov 4  }
   0xb   :  { %26 = dma.hbm_to_vmem [thread:$0]  %s397_s1, 128, %s21_s25, [#allocation3], %s322_s27, %s322_s27, %s323_s28  }
   0xc   :  { %319 = dma.done.wait [#allocation3], 128  }
   0xd   :  { %320 = vsyncadd [#allocation3], 4294967168  ;;  %v324_v0 = vmov 0.0   ;;  %vm325_vm0 = vmmov 0   ;;  %vm60_vm1 = vcmask 1046528   ;;  %vm56_vm2 = vcmask 113664  }
   0xe   :  { %267 = vmatprep.subr.bf16.mxu0 %v324_v0  ;;  %269 = vmatprep.mubr.msk.bf16.mxu0 %vm325_vm0, %v324_v0  ;;  %v294_v1 = vld [vmem:[#allocation2] sm:$0x7f]   ;;  %v295_v4 = vld [vmem:[%s399_s3 + $0x8] sm:$0xff]   ;;  %vm129_vm3 = vcmask 261120   ;;  %vm241_vm4 = vcmask 15360  }
   0xf   :  { %273 = vmatprep.subr.bf16.mxu1 %v324_v0  ;;  %277 = vmatprep.mubr.msk.bf16.mxu1 %vm325_vm0, %v324_v0  ;;  %v41_v2 = vld [vmem:[%s396_s0] sm:$0xf]  ;;  %v62_v3 = vsel %vm60_vm1, %v294_v1, 0  ;;  %v297_v6 = vld [vmem:[%s401_s5 + $0x8] sm:$0xff]  }
  0x10   :  { %268 = vmatpush3.bf16.msra.mxu0 %v62_v3  ;;  %274 = vmatpush3.bf16.msra.mxu1 %v295_v4  ;;  %v296_v5 = vld [vmem:[%s399_s3] sm:$0xff]  }
  0x11   :  { %281 = vmatprep.subr.bf16.mxu0 %v324_v0  ;;  %275 = vmatprep.subr.bf16.mxu1 %v324_v0  ;;  %v248_v7 = vld [vmem:[%s398_s2] ss:$0 sm:$0xff] }
  0x12   :  { %v298_v15 = vld [vmem:[%s401_s5] sm:$0xff]  }
  0x13   :  { %270 = vmatmul.mubr.msk.bf16.vlgmr.msra.gmra.mxu0 %vm56_vm2, %v41_v2  ;;  %v251_v16 = vld [vmem:[%s400_s4] ss:$0 sm:$0xff] }
  0x14   :  { %285 = vmatprep.mubr.msk.bf16.mxu0 %vm325_vm0, %v324_v0  ;;  %276 = vmatpush3.bf16.msra.mxu1 %v296_v5  ;;  %v255_v24 = vld [vmem:[%s402_s6] ss:$0 sm:$0xff] }
  0x15   :  { %282 = vmatpush3.bf16.msra.mxu0 %v297_v6 }
  0x16   :  { %283 = vmatprep.subr.bf16.mxu0 %v324_v0 }
  0x19   :  { %284 = vmatpush3.bf16.msra.mxu0 %v298_v15 }
  0xd3   :  { %v98_v8 = vpop.f32.mrf.mxu0 }
  0xd4   :  { %v99_v9 = vadd.f32 %v248_v7, %v98_v8 }
  0xd5   :  { %v271_v10 = vpop.f32.mrf.mxu0 }
  0xd6   :  { %v104_v11 = vmax.f32 %v99_v9, 0.0 }
  0xd7   :  { %v101_v12 = vpop.f32.mrf.mxu0 }
  0xd8   :  { %v105_v13 = vpack.c.bf16 %v104_v11, %v104_v11 }
  0xd9   :  { %v272_v14 = vpop.f32.mrf.mxu0 }
  0xda   :  { %278 = vmatmul.mubr.msk.bf16.vlgmr.msra.gmra.mxu1 %vm129_vm3, %v105_v13 }
 0x19a   :  { %v167_v17 = vpop.f32.mrf.mxu1 }
 0x19b   :  { %v168_v18 = vadd.f32 %v251_v16, %v167_v17 }
 0x19c   :  { %v279_v19 = vpop.f32.mrf.mxu1 }
 0x19d   :  { %v173_v20 = vmax.f32 %v168_v18, 0.0 }
 0x19e   :  { %v170_v21 = vpop.f32.mrf.mxu1 }
 0x19f   :  { %v174_v22 = vpack.c.bf16 %v173_v20, %v173_v20 }
 0x1a0   :  { %v280_v23 = vpop.f32.mrf.mxu1 }
 0x1a1   :  { %286 = vmatmul.mubr.msk.bf16.vlgmr.msra.gmra.mxu0 %vm129_vm3, %v174_v22 }
 0x261   :  { %v235_v25 = vpop.f32.mrf.mxu0 }
 0x262   :  { %v236_v26 = vadd.f32 %v255_v24, %v235_v25 }
 0x263   :  { %v287_v27 = vpop.f32.mrf.mxu0 }
 0x264   :  { %242 = vst.msk [vmem:[%s403_s7] sm:$0xff] %vm241_vm4, %v236_v26 }
 0x265   :  { %v238_v28 = vpop.f32.mrf.mxu0 }
 0x267   :  { %v288_v29 = vpop.f32.mrf.mxu0 }
 0x268   :  { %247 = vsyncpa [#allocation3], 1 }

</bundles_post_ra>
